<compile_context>
chip_gen: v7x
topology: tpu7x:2x2x1
jax: 0.10.0
libtpu: 0.0.40
codegen_flags: <defaults>
</compile_context>

<pallas_src>
import functools

import jax
import jax.numpy as jnp
from jax import lax
from jax.experimental import pallas as pl
from jax.experimental.pallas import tpu as pltpu

ALPHA = 0.25
GAMMA = 2.0
LOG_CLAMP = -100.0  # PyTorch's binary_cross_entropy clamps log() at -100
_LANES = 128


def _round_down(x, m):
    return (x // m) * m


def _pick_acc_rows(block_rows):
    """Largest convenient accumulator height that divides the row-block."""
    for d in (32, 16, 8):
        if block_rows % d == 0:
            return d
    return block_rows


def _focal_elem(x, t, gamma, binary_targets=False):
    """Elementwise focal loss WITHOUT the alpha factor (alpha hoisted to wrapper).

    Inputs must already be float32.  (x=1, t=1) yields exactly 0, which is what
    masked / padded elements are set to."""
    if binary_targets:
        # Hard-label fast path (exact for t in {0,1}): 1 EUP op per element.
        pt = t * x + (1.0 - t) * (1.0 - x)
        bce = jnp.minimum(-jnp.log(pt), -LOG_CLAMP)
    else:
        log_x = jnp.maximum(jnp.log(x), LOG_CLAMP)
        log_1mx = jnp.maximum(jnp.log(1.0 - x), LOG_CLAMP)
        s = t * (log_x - log_1mx) + log_1mx   # == t*log_x + (1-t)*log_1mx == -bce
        pt = jnp.exp(s)
        bce = -s

    omp = 1.0 - pt
    g = float(gamma)
    if g == 2.0:
        mod = omp * omp                 # VALU square: avoids exp/log pow lowering
    elif g == 1.0:
        mod = omp
    elif g == int(g) and 0 < int(g) <= 8:
        mod = omp
        for _ in range(int(g) - 1):
            mod = mod * omp
    else:
        mod = omp ** g                  # non-integer gamma: pow on EUP
    return mod * bce


def _focal_sum_kernel(x_ref, t_ref, out_ref, *, gamma, binary_targets,
                      block_rows, acc_rows, valid_rows):
    """Accumulates per-(sublane,lane) partial focal-loss sums into a resident
    (acc_rows, 128) output block; the final cross-lane reduce happens in XLA."""
    i = pl.program_id(0)

    @pl.when(i == 0)
    def _():
        out_ref[...] = jnp.zeros_like(out_ref)

    x = x_ref[...].astype(jnp.float32)
    t = t_ref[...].astype(jnp.float32)

    # Statically known: does the grid overhang the array?  If so, rows past
    # `valid_rows` in the last block contain undefined data -- replace them with
    # (x=1, t=1) BEFORE any log so they contribute exactly 0 (and can't NaN).
    if valid_rows % block_rows != 0:
        row_ids = lax.broadcasted_iota(jnp.int32, x.shape, 0)
        in_bounds = row_ids < (valid_rows - i * block_rows)
        x = jnp.where(in_bounds, x, 1.0)
        t = jnp.where(in_bounds, t, 1.0)

    fl = _focal_elem(x, t, gamma, binary_targets)

    # Pure-VALU fold of the (block_rows, 128) tile onto (acc_rows, 128);
    # acc_rows=32 gives 4 vregs -> 4 independent accumulation chains.
    out_ref[...] += fl.reshape(-1, acc_rows, _LANES).sum(axis=0)


def focal_loss(inputs, targets, alpha=ALPHA, gamma=GAMMA, reduction="mean",
               block_rows=4096, binary_targets=False):
    """Pallas focal loss. `inputs` are probabilities (post-sigmoid), any shape."""
    assert inputs.shape == targets.shape
    if reduction not in ("mean", "sum"):
        # TODO(synk): reduction='none' would need an elementwise-output kernel;
        # only the 'mean' / 'sum' hot paths are implemented here.
        raise NotImplementedError("reduction='none' not implemented in kernel")

    total = int(inputs.size)
    flat_x = inputs.reshape(-1)       # reshape of contiguous array: free bitcast
    flat_t = targets.reshape(-1)

    # Sub-128-element remainder handled by a tiny XLA epilogue (NO full-array
    # padding copy).  The main body is streamed through the Pallas kernel.
    rem = total % _LANES
    main = total - rem

    tail_sum = None
    if rem:
        tx = flat_x[main:].astype(jnp.float32)
        tt = flat_t[main:].astype(jnp.float32)
        tail_sum = jnp.sum(_focal_elem(tx, tt, gamma, binary_targets))

    if main == 0:
        total_sum = tail_sum
    else:
        rows = main // _LANES
        # Tile choice: big row blocks to amortize per-step pipeline overhead,
        # shrink to a single full-extent block for small inputs.  Blocks are a
        # multiple of 32 rows (sublane aligned, fold-friendly) and never exceed
        # the array, so only the *last* block can be partial (masked in-kernel).
        if block_rows >= rows or rows <= 32:
            blk = rows
        else:
            blk = max(32, _round_down(min(block_rows, rows), 32))
        acc_rows = _pick_acc_rows(blk)
        steps = pl.cdiv(rows, blk)

        if rem:
            x2d = flat_x[:main].reshape(rows, _LANES)
            t2d = flat_t[:main].reshape(rows, _LANES)
        else:
            x2d = flat_x.reshape(rows, _LANES)   # pure bitcast, no copy
            t2d = flat_t.reshape(rows, _LANES)

        kernel = functools.partial(
            _focal_sum_kernel, gamma=gamma, binary_targets=binary_targets,
            block_rows=blk, acc_rows=acc_rows, valid_rows=rows)

        in_bytes = main * (x2d.dtype.itemsize + t2d.dtype.itemsize)
        cost = pl.CostEstimate(
            flops=12 * main,
            transcendentals=(1 if binary_targets else 3) * main,
            bytes_accessed=in_bytes + 4 * acc_rows * _LANES,
        )

        partials = pl.pallas_call(
            kernel,
            out_shape=jax.ShapeDtypeStruct((acc_rows, _LANES), jnp.float32),
            grid_spec=pltpu.PrefetchScalarGridSpec(
                num_scalar_prefetch=0,
                grid=(steps,),
                in_specs=[
                    pl.BlockSpec((blk, _LANES), lambda i: (i, 0)),
                    pl.BlockSpec((blk, _LANES), lambda i: (i, 0)),
                ],
                out_specs=pl.BlockSpec((acc_rows, _LANES), lambda i: (0, 0)),
            ),
            compiler_params=pltpu.CompilerParams(
                dimension_semantics=("arbitrary",),
                vmem_limit_bytes=48 * 1024 * 1024,
            ),
            cost_estimate=cost,
        )(x2d, t2d)

        total_sum = jnp.sum(partials)   # tiny cross-lane reduce done once in XLA
        if tail_sum is not None:
            total_sum = total_sum + tail_sum

    # alpha (and 1/N for 'mean') factored out of the sum -- exact.  The divisor
    # is computed in python float64 so totals > 2^24 don't lose precision.
    scale = alpha if reduction == "sum" else alpha / float(total)
    return total_sum * scale


def _focal_loss_ref(inputs, targets, alpha=ALPHA, gamma=GAMMA):
    x = inputs.astype(jnp.float32)
    t = targets.astype(jnp.float32)
    bce = -(t * jnp.maximum(jnp.log(x), LOG_CLAMP)
            + (1.0 - t) * jnp.maximum(jnp.log(1.0 - x), LOG_CLAMP))
    pt = jnp.exp(-bce)
    fl = alpha * (1.0 - pt) ** gamma * bce
    return jnp.mean(fl)


if __name__ == "__main__":
    key = jax.random.PRNGKey(0)
    k1, k2, k3, k4 = jax.random.split(key, 4)

    # NCHW-shaped inputs, as the module would see from a conv head: (2, 4, 16, 16)
    logits = jax.random.normal(k1, (2, 4, 16, 16), dtype=jnp.float32)
    inputs = jax.nn.sigmoid(logits)                       # probabilities in (0,1)
    targets = jax.random.bernoulli(k2, 0.3, (2, 4, 16, 16)).astype(jnp.float32)

    out = jax.block_until_ready(focal_loss(inputs, targets))
    ref = _focal_loss_ref(inputs, targets)
    assert jnp.allclose(out, ref, rtol=1e-5, atol=1e-6), (out, ref)

    # Gated hard-label fast path (targets here are exactly {0,1}).
    out_hard = jax.block_until_ready(focal_loss(inputs, targets, binary_targets=True))
    assert jnp.allclose(out_hard, ref, rtol=1e-5, atol=1e-6), (out_hard, ref)

    # Odd-sized input with soft labels: exercises the multi-step grid, the
    # in-kernel tail-block masking and the sub-128 XLA epilogue (no padding copy).
    logits2 = jax.random.normal(k3, (3, 5, 17, 19), dtype=jnp.float32)
    inputs2 = jax.nn.sigmoid(logits2)
    targets2 = jax.random.uniform(k4, (3, 5, 17, 19), dtype=jnp.float32)
    out2 = jax.block_until_ready(focal_loss(inputs2, targets2, block_rows=8))
    ref2 = _focal_loss_ref(inputs2, targets2)
    assert jnp.allclose(out2, ref2, rtol=1e-5, atol=1e-6), (out2, ref2)

    print("KERNEL_OK")
</pallas_src>

<mosaic_0001>
module attributes {stable_mosaic.version = 11 : i64} {
  func.func @_focal_sum_kernel(%arg0: i32, %arg1: memref<16x128xf32, #tpu.memory_space<vmem>>, %arg2: memref<16x128xf32, #tpu.memory_space<vmem>>, %arg3: memref<16x128xf32, #tpu.memory_space<vmem>>) attributes {dimension_semantics = [#tpu.dimension_semantics<arbitrary>], iteration_bounds = array<i64: 1>, scalar_prefetch = 0 : i64, scratch_operands = 0 : i64, tpu.core_type = #tpu.core_type<tc>, window_params = [{transform_indices = @transform_0, window_bounds = array<i64: 16, 128>}, {transform_indices = @transform_1, window_bounds = array<i64: 16, 128>}, {pipeline_mode = #tpu.pipeline_mode<synchronous>, transform_indices = @transform_2, window_bounds = array<i64: 16, 128>}]} {
    %c0_i32 = arith.constant 0 : i32
    %0 = arith.cmpi eq, %arg0, %c0_i32 : i32
    %1 = arith.extui %0 : i1 to i32
    %c0_i32_0 = arith.constant 0 : i32
    %2 = arith.cmpi ne, %1, %c0_i32_0 : i32
    scf.if %2 {
      %cst_13 = arith.constant 0.000000e+00 : f32
      %28 = vector.broadcast %cst_13 : f32 to vector<16x128xf32>
      %c0_14 = arith.constant 0 : index
      %c0_15 = arith.constant 0 : index
      %29 = vector.load %arg3[%c0_14, %c0_15] : memref<16x128xf32, #tpu.memory_space<vmem>>, vector<16x128xf32>
      tpu.vector_store %arg3[%c0_14, %c0_15], %28 {strides = array<i32>} : memref<16x128xf32, #tpu.memory_space<vmem>>, vector<16x128xf32>,
    } else {
    }
    %c0 = arith.constant 0 : index
    %c0_1 = arith.constant 0 : index
    %3 = vector.load %arg1[%c0, %c0_1] : memref<16x128xf32, #tpu.memory_space<vmem>>, vector<16x128xf32>
    %c0_2 = arith.constant 0 : index
    %c0_3 = arith.constant 0 : index
    %4 = vector.load %arg2[%c0_2, %c0_3] : memref<16x128xf32, #tpu.memory_space<vmem>>, vector<16x128xf32>
    %5 = math.log %3 : vector<16x128xf32>
    %cst = arith.constant -1.000000e+02 : f32
    %6 = vector.broadcast %cst : f32 to vector<16x128xf32>
    %7 = arith.maximumf %5, %6 : vector<16x128xf32>
    %cst_4 = arith.constant 1.000000e+00 : f32
    %8 = vector.broadcast %cst_4 : f32 to vector<16x128xf32>
    %9 = arith.subf %8, %3 : vector<16x128xf32>
    %10 = math.log %9 : vector<16x128xf32>
    %cst_5 = arith.constant -1.000000e+02 : f32
    %11 = vector.broadcast %cst_5 : f32 to vector<16x128xf32>
    %12 = arith.maximumf %10, %11 : vector<16x128xf32>
    %13 = arith.subf %7, %12 : vector<16x128xf32>
    %14 = arith.mulf %4, %13 : vector<16x128xf32>
    %15 = arith.addf %14, %12 : vector<16x128xf32>
    %16 = math.exp %15 : vector<16x128xf32>
    %cst_6 = arith.constant 0.000000e+00 : f32
    %17 = vector.broadcast %cst_6 : f32 to vector<16x128xf32>
    %18 = arith.subf %17, %15 : vector<16x128xf32>
    %cst_7 = arith.constant 1.000000e+00 : f32
    %19 = vector.broadcast %cst_7 : f32 to vector<16x128xf32>
    %20 = arith.subf %19, %16 : vector<16x128xf32>
    %21 = arith.mulf %20, %20 : vector<16x128xf32>
    %22 = arith.mulf %21, %18 : vector<16x128xf32>
    %c0_8 = arith.constant 0 : index
    %c0_9 = arith.constant 0 : index
    %23 = vector.load %arg3[%c0_8, %c0_9] : memref<16x128xf32, #tpu.memory_space<vmem>>, vector<16x128xf32>
    %24 = vector.shape_cast %22 : vector<16x128xf32> to vector<1x16x128xf32>
    %cst_10 = arith.constant dense<0.000000e+00> : vector<16x128xf32>
    %25 = vector.multi_reduction <add>, %24, %cst_10 [0] : vector<1x16x128xf32> to vector<16x128xf32>
    %26 = arith.addf %23, %25 : vector<16x128xf32>
    %c0_11 = arith.constant 0 : index
    %c0_12 = arith.constant 0 : index
    %27 = vector.load %arg3[%c0_11, %c0_12] : memref<16x128xf32, #tpu.memory_space<vmem>>, vector<16x128xf32>
    tpu.vector_store %arg3[%c0_11, %c0_12], %26 {strides = array<i32>} : memref<16x128xf32, #tpu.memory_space<vmem>>, vector<16x128xf32>,
    return
  }
  func.func @transform_0(%arg0: i32) -> (i32, i32) {
    %c0_i32 = arith.constant 0 : i32
    %c0_i32_0 = arith.constant 0 : i32
    return %arg0, %c0_i32 : i32, i32
  }
  func.func @transform_1(%arg0: i32) -> (i32, i32) {
    %c0_i32 = arith.constant 0 : i32
    %c0_i32_0 = arith.constant 0 : i32
    return %arg0, %c0_i32 : i32, i32
  }
  func.func @transform_2(%arg0: i32) -> (i32, i32) {
    %c0_i32 = arith.constant 0 : i32
    %c0_i32_0 = arith.constant 0 : i32
    %c0_i32_1 = arith.constant 0 : i32
    return %c0_i32, %c0_i32_0 : i32, i32
  }
}

</mosaic_0001>

<bundles_post_ra>
// kernel: tpu_custom_call.1
= control target key start
LH: loop header
LB: loop body
LE: loop exit
PB: predicated region body
PF: predicated region fallthrough
CT: control target
= control target key end

     0   :  { %7 = vsyncpa [#allocation3], 0  ;;  %s263_s0 = inlined_call_operand.hbm [shape: f32[16,128], index: 0, kind: input, shape index: {}]   ;;  %s264_s1 = inlined_call_operand.hbm [shape: f32[16,128], index: 1, kind: input, shape index: {}]   ;;  %s265_s2 = inlined_call_operand.hbm [shape: f32[16,128], index: 2, kind: output, shape index: {}]  }
   0x1   :  { %8 = vsyncpa [#allocation6], 0 }
   0x2   :  { %9 = vsyncpa [#allocation4], 0  ;;  %s198_s9 = smov [#allocation2]   ;;  %s126_s13 = scalar_lea.hbm %s263_s0, 256 }
   0x3   :  { %s15_s10 = sshll.u32 %s198_s9, 4  ;;  %p127_p0 = scmp.ne.s32.totalorder %s263_s0, %s126_s13  ;;  %s16_s10 = int_to_ptr.vmem [resolvable:$true] %s15_s10 }
   0x4   :  { %p130_p1 = scmp.lt.u32.totalorder %s126_s13, %s263_s0 }
   0x6   :  { %p132_p2 = pnand %p130_p1, %p127_p0 }
   0x8   :  { %135 = shalt.err (!%p132_p2)
}
   0x9   :  { %s136_s18 = scalar_lea.vmem %s16_s10, 256  ;;  %p141_p4 = scmp.lt.s32.totalorder %s16_s10, %s16_s10 }
   0xa   :  { %p137_p3 = scmp.ne.s32.totalorder %s16_s10, %s136_s18  ;;  %p142_p5 = scmp.lt.s32.totalorder %s136_s18, %s136_s18 }
   0xc   :  { %p143_p6 = por %p142_p5, %p141_p4 }
   0xe   :  { %p144_p7 = pnand %p143_p6, %p137_p3 }
  0x10   :  { %147 = shalt.err (!%p144_p7)
}
  0x11   :  { %s199_s19 = smov 128   ;;  %s200_s20 = smov 8  }
  0x12   :  { %21 = dma.hbm_to_vmem [thread:$0]  %s263_s0, 256, %s16_s10, [#allocation3], %s199_s19, %s199_s19, %s200_s20  }
  0x13   :  { %s201_s23 = smov [#allocation5]   ;;  %s148_s27 = scalar_lea.hbm %s264_s1, 256 }
  0x14   :  { %s27_s24 = sshll.u32 %s201_s23, 4  ;;  %p149_p8 = scmp.ne.s32.totalorder %s264_s1, %s148_s27  ;;  %s28_s24 = int_to_ptr.vmem [resolvable:$true] %s27_s24 }
  0x15   :  { %p152_p9 = scmp.lt.u32.totalorder %s148_s27, %s264_s1 }
  0x17   :  { %p154_p10 = pnand %p152_p9, %p149_p8 }
  0x19   :  { %157 = shalt.err (!%p154_p10)
}
  0x1a   :  { %s158_s4 = scalar_lea.vmem %s28_s24, 256  ;;  %p163_p12 = scmp.lt.s32.totalorder %s28_s24, %s28_s24 }
  0x1b   :  { %p159_p11 = scmp.ne.s32.totalorder %s28_s24, %s158_s4  ;;  %p164_p13 = scmp.lt.s32.totalorder %s158_s4, %s158_s4 }
  0x1d   :  { %p165_p0 = por %p164_p13, %p163_p12 }
  0x1f   :  { %p166_p1 = pnand %p165_p0, %p159_p11 }
  0x21   :  { %169 = shalt.err (!%p166_p1)
}
  0x22   :  { %33 = dma.hbm_to_vmem [thread:$0]  %s264_s1, 256, %s28_s24, [#allocation6], %s199_s19, %s199_s19, %s200_s20  }
  0x23   :  { %192 = dma.done.wait [#allocation3], 256  }
  0x24   :  { %193 = vsyncadd [#allocation3], 4294967040 }
  0x25   :  { %194 = dma.done.wait [#allocation6], 256  }
  0x26   :  { %195 = vsyncadd [#allocation6], 4294967040  ;;  %v46_v0 = vld [vmem:[#allocation2] sm:$0xff]  ;;  %v47_v1 = vld [vmem:[#allocation2 + $0x8] sm:$0xff]  ;;  %s202_s1 = smov [#allocation7]  }
  0x27   :  { %114 = vlog2.f32 %v46_v0  ;;  %v56_v2 = vsub.f32 1.0, %v46_v0  ;;  %v57_v3 = vsub.f32 1.0, %v47_v1  ;;  %v48_v15 = vld [vmem:[#allocation5] sm:$0xff]  ;;  %v49_v18 = vld [vmem:[#allocation5 + $0x8] sm:$0xff]  ;;  %s95_s6 = sshll.u32 %s202_s1, 4  ;;  %s96_s6 = int_to_ptr.vmem [resolvable:$true] %s95_s6 }
  0x28   :  { %116 = vlog2.f32 %v47_v1  ;;  %s170_s7 = scalar_lea.vmem %s96_s6, 256  ;;  %p175_p3 = scmp.lt.s32.totalorder %s96_s6, %s96_s6 }
  0x29   :  { %118 = vlog2.f32 %v56_v2  ;;  %p171_p2 = scmp.ne.s32.totalorder %s96_s6, %s170_s7  ;;  %p176_p4 = scmp.lt.s32.totalorder %s170_s7, %s170_s7 }
  0x2a   :  { %120 = vlog2.f32 %v57_v3 }
  0x2b   :  { %p177_p5 = por %p176_p4, %p175_p3 }
  0x2d   :  { %p178_p6 = pnand %p177_p5, %p171_p2 }
  0x31   :  { %v115_v4 = vpop.eup %114 }
  0x32   :  { %v117_v5 = vpop.eup %116  ;;  %v51_v6 = vmul.f32 0.6931472, %v115_v4 }
  0x33   :  { %v119_v7 = vpop.eup %118  ;;  %v53_v8 = vmul.f32 0.6931472, %v117_v5 }
  0x34   :  { %v121_v9 = vpop.eup %120  ;;  %v54_v10 = vmax.f32 %v51_v6, -100.0  ;;  %v59_v11 = vmul.f32 0.6931472, %v119_v7 }
  0x35   :  { %v55_v12 = vmax.f32 %v53_v8, -100.0  ;;  %v61_v13 = vmul.f32 0.6931472, %v121_v9 }
  0x36   :  { %v62_v14 = vmax.f32 %v59_v11, -100.0 }
  0x37   :  { %v63_v16 = vmax.f32 %v61_v13, -100.0 }
  0x38   :  { %v64_v17 = vsub.f32 %v54_v10, %v62_v14 }
  0x39   :  { %v65_v19 = vsub.f32 %v55_v12, %v63_v16 }
  0x3a   :  { %v66_v20 = vmul.f32 %v64_v17, %v48_v15 }
  0x3b   :  { %v67_v21 = vmul.f32 %v65_v19, %v49_v18 }
  0x3c   :  { %v68_v22 = vadd.f32 %v66_v20, %v62_v14 }
  0x3d   :  { %v69_v23 = vadd.f32 %v67_v21, %v63_v16 }
  0x3e   :  { %v70_v24 = vmul.f32 1.442695, %v68_v22  ;;  %v74_v28 = vsub.f32 0.0, %v68_v22 }
  0x3f   :  { %v72_v25 = vmul.f32 1.442695, %v69_v23  ;;  %v75_v30 = vsub.f32 0.0, %v69_v23 }
  0x40   :  { %122 = vpow2.f32 %v70_v24 }
  0x41   :  { %124 = vpow2.f32 %v72_v25 }
  0x4a   :  { %v123_v26 = vpop.eup %122 }
  0x4b   :  { %v125_v27 = vpop.eup %124  ;;  %v76_v29 = vsub.f32 1.0, %v123_v26 }
  0x4c   :  { %v77_v31 = vsub.f32 1.0, %v125_v27 }
  0x4d   :  { %v78_v32 = vmul.f32 %v76_v29, %v76_v29 }
  0x4e   :  { %v79_v33 = vmul.f32 %v77_v31, %v77_v31 }
  0x4f   :  { %v80_v34 = vmul.f32 %v78_v32, %v74_v28 }
  0x50   :  { %v81_v35 = vmul.f32 %v79_v33, %v75_v30 }
  0x51   :  { %88 = vst [vmem:[#allocation7] sm:$0xff] %v80_v34 }
  0x52   :  { %89 = vst [vmem:[#allocation7 + $0x8] sm:$0xff] %v81_v35 }
  0x53   :  { %181 = shalt.err (!%p178_p6)
}
  0x54   :  { %s182_s10 = scalar_lea.hbm %s265_s2, 256 }
  0x55   :  { %p183_p7 = scmp.ne.s32.totalorder %s265_s2, %s182_s10  ;;  %p186_p8 = scmp.lt.u32.totalorder %s182_s10, %s265_s2 }
  0x57   :  { %p188_p9 = pnand %p186_p8, %p183_p7 }
  0x59   :  { %191 = shalt.err (!%p188_p9)
}
  0x5a   :  { %101 = dma.vmem_to_hbm [thread:$0]  %s96_s6, 256, %s265_s2, [#allocation4], %s199_s19, %s199_s19, %s200_s20  }
  0x5b   :  { %196 = dma.done.wait [#allocation4], 256  }
  0x5c   :  { %197 = vsyncadd [#allocation4], 4294967040 }
  0x5d   :  { %105 = vsyncpa [#allocation3], 1 }
  0x5e   :  { %106 = vsyncpa [#allocation6], 1 }
  0x5f   :  { %107 = vsyncpa [#allocation4], 1 }

</bundles_post_ra>
